<compile_context>
chip_gen: v5e
topology: v5e:2x2
jax: 0.10.0
libtpu: 0.0.40
codegen_flags: <defaults>
</compile_context>

<pallas_src>
import functools

import jax
import jax.numpy as jnp
from jax.experimental import pallas as pl
from jax.experimental.pallas import tpu as pltpu


def _pooling_kernel(x_ref, o_ref, *, inv_k):
    x = x_ref[...].astype(jnp.float32)                # (tn, K)
    mx = jnp.max(x, axis=-1, keepdims=True)           # (tn, 1)
    sm = jnp.sum(x, axis=-1, keepdims=True)           # (tn, 1)
    o_ref[...] = (mx + sm * inv_k).astype(o_ref.dtype)


def _pick_tile_rows(n_rows, k, itemsize, *, max_rows=8192,
                    vmem_budget_bytes=12 * 1024 * 1024):
    """Largest row tile that fits the VMEM budget, keeping >= 2 grid steps."""
    if n_rows <= 8:
        return n_rows                      # single full-extent block is allowed
    lane = 128
    # Per-row VMEM cost: lane-padded input row + lane-padded (tn,1) output row,
    # both double-buffered by the pipeline.
    in_row = -(-k // lane) * lane * itemsize
    out_row = lane * 4
    per_row = 2 * (in_row + out_row)
    cap = max(8, (vmem_budget_bytes // per_row) // 8 * 8)
    tn = min(max_rows, cap)
    # Prefer at least two grid steps (v7x has 2 TensorCores; harmless elsewhere).
    half = -(-n_rows // 2)
    half = -(-half // 8) * 8
    return max(8, min(tn, half))


def pooling(knn_x_w, *, max_tile_rows=8192):
    """knn_x_w: (B, C, G, K) float array -> (B, C, G) = max(-1) + mean(-1)."""
    B, C, G, K = knn_x_w.shape
    N = B * C * G
    x2d = knn_x_w.reshape(N, K)            # zero-copy view, no padding copy

    tn = _pick_tile_rows(N, K, knn_x_w.dtype.itemsize, max_rows=max_tile_rows)
    grid = (pl.cdiv(N, tn),)               # trailing partial block: writes clipped

    out = pl.pallas_call(
        functools.partial(_pooling_kernel, inv_k=1.0 / K),
        out_shape=jax.ShapeDtypeStruct((N, 1), knn_x_w.dtype),
        grid=grid,
        in_specs=[pl.BlockSpec((tn, K), lambda i: (i, 0))],
        out_specs=pl.BlockSpec((tn, 1), lambda i: (i, 0)),
        compiler_params=pltpu.CompilerParams(
            dimension_semantics=("parallel",),
            vmem_limit_bytes=32 * 1024 * 1024,
        ),
    )(x2d)

    return out.reshape(B, C, G)


def pooling_ref(knn_x_w):
    return jnp.max(knn_x_w, axis=-1) + jnp.mean(knn_x_w, axis=-1)


if __name__ == "__main__":
    key = jax.random.PRNGKey(0)
    B, C, G, K = 2, 4, 16, 16
    knn_x_w = jax.random.normal(key, (B, C, G, K), dtype=jnp.float32)

    out = jax.block_until_ready(pooling(knn_x_w))
    ref = pooling_ref(knn_x_w)

    assert out.shape == (B, C, G)
    assert jnp.allclose(out, ref, atol=1e-5, rtol=1e-5)

    print("KERNEL_OK")
</pallas_src>

<mosaic_0001>
module attributes {stable_mosaic.version = 11 : i64} {
  func.func @_pooling_kernel(%arg0: i32, %arg1: memref<64x16xf32, #tpu.memory_space<vmem>>, %arg2: memref<64x1xf32, #tpu.memory_space<vmem>>) attributes {dimension_semantics = [#tpu.dimension_semantics<parallel>], iteration_bounds = array<i64: 2>, scalar_prefetch = 0 : i64, scratch_operands = 0 : i64, tpu.core_type = #tpu.core_type<tc>, window_params = [{transform_indices = @transform_0, window_bounds = array<i64: 64, 16>}, {transform_indices = @transform_1, window_bounds = array<i64: 64, 1>}]} {
    %c0 = arith.constant 0 : index
    %c0_0 = arith.constant 0 : index
    %0 = vector.load %arg1[%c0, %c0_0] : memref<64x16xf32, #tpu.memory_space<vmem>>, vector<64x16xf32>
    %cst = arith.constant dense<0xFF800000> : vector<64xf32>
    %1 = vector.multi_reduction <maximumf>, %0, %cst [1] : vector<64x16xf32> to vector<64xf32>
    %2 = vector.shape_cast %1 : vector<64xf32> to vector<64x1xf32>
    %cst_1 = arith.constant dense<0.000000e+00> : vector<64xf32>
    %3 = vector.multi_reduction <add>, %0, %cst_1 [1] : vector<64x16xf32> to vector<64xf32>
    %4 = vector.shape_cast %3 : vector<64xf32> to vector<64x1xf32>
    %cst_2 = arith.constant 6.250000e-02 : f32
    %5 = vector.broadcast %cst_2 : f32 to vector<64x1xf32>
    %6 = arith.mulf %4, %5 : vector<64x1xf32>
    %7 = arith.addf %2, %6 : vector<64x1xf32>
    %c0_3 = arith.constant 0 : index
    %c0_4 = arith.constant 0 : index
    %8 = vector.load %arg2[%c0_3, %c0_4] : memref<64x1xf32, #tpu.memory_space<vmem>>, vector<64x1xf32>
    tpu.vector_store %arg2[%c0_3, %c0_4], %7 {strides = array<i32>} : memref<64x1xf32, #tpu.memory_space<vmem>>, vector<64x1xf32>,
    return
  }
  func.func @transform_0(%arg0: i32) -> (i32, i32) {
    %c0_i32 = arith.constant 0 : i32
    %c0_i32_0 = arith.constant 0 : i32
    return %arg0, %c0_i32 : i32, i32
  }
  func.func @transform_1(%arg0: i32) -> (i32, i32) {
    %c0_i32 = arith.constant 0 : i32
    %c0_i32_0 = arith.constant 0 : i32
    return %arg0, %c0_i32 : i32, i32
  }
}

</mosaic_0001>

<bundles_post_ra>
// kernel: tpu_custom_call.1
= control target key start
LH: loop header
LB: loop body
LE: loop exit
PB: predicated region body
PF: predicated region fallthrough
CT: control target
= control target key end

     0   :  { %s295_s6 = smov 0   ;;  %s353_s0 = inlined_call_operand.vmem [shape: f32[128,16], index: 0, kind: input, shape index: {}]   ;;  %s354_s1 = inlined_call_operand.vmem [shape: f32[128,1], index: 1, kind: output, shape index: {}]  }
   0x1 LB: > { %s258_s7 = sadd.s32 4294967295, %s283_s6   ;;  %p262_p0 = scmp.ge.s32.totalorder %s283_s6, 1  ;;  %s283_s6 = sphi %s295_s6, %s11_s6  }
   0x2   : > { %p88_p1 = scmp.lt.s32.totalorder %s283_s6, 3 }
   0x4   : > { %p89_p2 = pnand %p262_p0, %p88_p1 }
   0x5   : > { %s263_s8 = sshll.u32 (!%p89_p2), %s258_s7, 3 }
   0x6   : > { %92 = sbr.rel (%p89_p2) target bundleno = 176 (0xb0), region = 24  ;;  %p109_p3 = scmp.lt.s32.totalorder (!%p89_p2), %s263_s8, 15 }
   0xb   : > { %s356_s8 = smov (!%p109_p3, %s263_s8), 15  ;;  %vm128_vm0 = vcmask 130048   ;;  %vm193_vm1 = vcmask 7168  }
   0xc   : > { %s264_s9 = sshll.u32 %s356_s8, 3 }
   0xd   : > { %s112_s12 = scalar_lea.vmem %s353_s0, %s264_s9  ;;  %s332_s15 = scalar_lea.vmem %s354_s1, %s264_s9 }
   0xe   : > { %v122_v0 = vld [vmem:[%s112_s12 + $0x10] sm:$0xff]  ;;  %v120_v1 = vld [vmem:[%s112_s12] sm:$0xff]  ;;  %v123_v5 = vld [vmem:[%s112_s12 + $0x18] sm:$0xff] }
   0xf   : > { %v159_v2 = vsel %vm128_vm0, %v122_v0, 0.0  ;;  %v153_v3 = vsel %vm128_vm0, %v120_v1, 0.0  ;;  %v129_v4 = vsel %vm128_vm0, %v120_v1, -inf  ;;  %v121_v6 = vld [vmem:[%s112_s12 + $0x8] sm:$0xff]  ;;  %v162_v7 = vsel %vm128_vm0, %v123_v5, 0.0  ;;  %v126_v10 = vld [vmem:[%s112_s12 + $0x30] sm:$0xff] }
  0x10   : > { %160 = vadd.xlane.f32.xlu2 %v159_v2  ;;  %154 = vadd.xlane.f32.xlu1 %v153_v3  ;;  %v156_v8 = vsel %vm128_vm0, %v121_v6, 0.0  ;;  %v132_v9 = vsel %vm128_vm0, %v121_v6, -inf  ;;  %v125_v11 = vld [vmem:[%s112_s12 + $0x28] sm:$0xff]  ;;  %v124_v12 = vld [vmem:[%s112_s12 + $0x20] sm:$0xff]  ;;  %v171_v13 = vsel %vm128_vm0, %v126_v10, 0.0  ;;  %v127_v16 = vld [vmem:[%s112_s12 + $0x38] sm:$0xff] }
  0x11   : > { %130 = vmax.xlane.f32.xlu0 %v129_v4  ;;  %v168_v14 = vsel %vm128_vm0, %v125_v11, 0.0  ;;  %v165_v15 = vsel %vm128_vm0, %v124_v12, 0.0  ;;  %v138_v17 = vsel %vm128_vm0, %v123_v5, -inf  ;;  %v135_v18 = vsel %vm128_vm0, %v122_v0, -inf }
  0x12   : > { %v174_v19 = vsel %vm128_vm0, %v127_v16, 0.0  ;;  %v147_v20 = vsel %vm128_vm0, %v126_v10, -inf  ;;  %v144_v21 = vsel %vm128_vm0, %v125_v11, -inf  ;;  %v141_v22 = vsel %vm128_vm0, %v124_v12, -inf }
  0x13   : > { %v150_v23 = vsel %vm128_vm0, %v127_v16, -inf }
  0x18   : > { %163 = vadd.xlane.f32.xlu2 %v162_v7  ;;  %157 = vadd.xlane.f32.xlu1 %v156_v8 }
  0x19   : > { %133 = vmax.xlane.f32.xlu0 %v132_v9 }
  0x20   : > { %172 = vadd.xlane.f32.xlu2 %v171_v13  ;;  %169 = vadd.xlane.f32.xlu1 %v168_v14 }
  0x21   : > { %166 = vadd.xlane.f32.xlu0 %v165_v15 }
  0x28   : > { %139 = vmax.xlane.f32.xlu2 %v138_v17  ;;  %136 = vmax.xlane.f32.xlu1 %v135_v18 }
  0x29   : > { %175 = vadd.xlane.f32.xlu0 %v174_v19 }
  0x30   : > { %148 = vmax.xlane.f32.xlu2 %v147_v20  ;;  %145 = vmax.xlane.f32.xlu1 %v144_v21 }
  0x31   : > { %142 = vmax.xlane.f32.xlu0 %v141_v22 }
  0x39   : > { %151 = vmax.xlane.f32.xlu0 %v150_v23 }
  0x83   : > { %v161_v24 = vpop.xlane.xlu2 %160  ;;  %v155_v25 = vpop.xlane.xlu1 %154 }
  0x84   : > { %v177_v26 = vmul.f32 0.0625, %v155_v25  ;;  %v131_v27 = vpop.xlane.xlu0 %130  ;;  %v179_v37 = vmul.f32 0.0625, %v161_v24 }
  0x86   : > { %v185_v28 = vadd.f32 %v177_v26, %v131_v27 }
  0x88   : > { %194 = vst.msk [vmem:[%s332_s15] sm:$0xff] %vm193_vm1, %v185_v28 }
  0x8b   : > { %v164_v29 = vpop.xlane.xlu2 %163  ;;  %v158_v30 = vpop.xlane.xlu1 %157 }
  0x8c   : > { %v178_v31 = vmul.f32 0.0625, %v158_v30  ;;  %v134_v32 = vpop.xlane.xlu0 %133  ;;  %v180_v38 = vmul.f32 0.0625, %v164_v29 }
  0x8e   : > { %v186_v33 = vadd.f32 %v178_v31, %v134_v32 }
  0x90   : > { %195 = vst.msk [vmem:[%s332_s15 + $0x8] sm:$0xff] %vm193_vm1, %v186_v33 }
  0x93   : > { %v173_v34 = vpop.xlane.xlu2 %172  ;;  %v170_v35 = vpop.xlane.xlu1 %169 }
  0x94   : > { %v167_v36 = vpop.xlane.xlu0 %166  ;;  %v183_v44 = vmul.f32 0.0625, %v173_v34  ;;  %v182_v45 = vmul.f32 0.0625, %v170_v35 }
  0x95   : > { %v181_v46 = vmul.f32 0.0625, %v167_v36 }
  0x9b   : > { %v140_v39 = vpop.xlane.xlu2 %139  ;;  %v137_v40 = vpop.xlane.xlu1 %136 }
  0x9c   : > { %v188_v41 = vadd.f32 %v180_v38, %v140_v39  ;;  %v187_v42 = vadd.f32 %v179_v37, %v137_v40  ;;  %v176_v43 = vpop.xlane.xlu0 %175 }
  0x9d   : > { %v184_v53 = vmul.f32 0.0625, %v176_v43 }
  0x9e   : > { %197 = vst.msk [vmem:[%s332_s15 + $0x18] sm:$0xff] %vm193_vm1, %v188_v41 }
  0x9f   : > { %196 = vst.msk [vmem:[%s332_s15 + $0x10] sm:$0xff] %vm193_vm1, %v187_v42 }
  0xa3   : > { %v149_v47 = vpop.xlane.xlu2 %148  ;;  %v146_v48 = vpop.xlane.xlu1 %145 }
  0xa4   : > { %v191_v49 = vadd.f32 %v183_v44, %v149_v47  ;;  %v190_v50 = vadd.f32 %v182_v45, %v146_v48  ;;  %v143_v51 = vpop.xlane.xlu0 %142 }
  0xa5   : > { %v189_v52 = vadd.f32 %v181_v46, %v143_v51 }
  0xa6   : > { %200 = vst.msk [vmem:[%s332_s15 + $0x30] sm:$0xff] %vm193_vm1, %v191_v49 }
  0xa7   : > { %199 = vst.msk [vmem:[%s332_s15 + $0x28] sm:$0xff] %vm193_vm1, %v190_v50 }
  0xa8   : > { %198 = vst.msk [vmem:[%s332_s15 + $0x20] sm:$0xff] %vm193_vm1, %v189_v52 }
  0xac   : > { %v152_v54 = vpop.xlane.xlu0 %151 }
  0xad   : > { %v192_v55 = vadd.f32 %v184_v53, %v152_v54 }
  0xaf   : > { %201 = vst.msk [vmem:[%s332_s15 + $0x38] sm:$0xff] %vm193_vm1, %v192_v55 }
  0xb0 PF: > { %s11_s6 = sadd.s32 1, %s283_s6  }
  0xb1   : > { %p8_p4 = scmp.ge.s32.totalorder %s11_s6, 4  }
  0xb3   :  { %10 = sbr.rel (!%p8_p4) target bundleno = 1 (0x1), region = 54 }

</bundles_post_ra>
